<compile_context>
chip_gen: v7x
topology: tpu7x:2x2x1
jax: 0.10.0
libtpu: 0.0.40
codegen_flags: <defaults>
</compile_context>

<pallas_src>
import jax
import jax.numpy as jnp
import numpy as np
from jax.experimental import pallas as pl
from jax.experimental.pallas import tpu as pltpu


# ----------------------------- config ------------------------------------
class Configs:
    # AvgPool1d has no learnable weights; the module "parameters" are just
    # the pooling kernel sizes (odd so output length == input length).
    avgpool_sizes = [3, 5, 7, 9, 11, 13]


def get_k_for_seq_len(seq_len):
    if seq_len == 96:
        return 6
    elif seq_len == 48:
        return 4
    elif seq_len == 24:
        return 2
    elif seq_len == 12:
        return 2
    else:
        raise ValueError(f"Unsupported sequence length: {seq_len}")


def _round_up(a, b):
    return (a + b - 1) // b * b


def make_avg_matrix(T, size, dtype=jnp.float32):
    """Banded matrix A with A[t, u] = 1/size for u in [t-pad, t+pad] ∩ [0, T-1].

    Equivalent to nn.AvgPool1d(size, stride=1, padding=size//2,
    count_include_pad=True) applied along the time axis (odd `size`).
    """
    pad = size // 2
    t = jnp.arange(T)[:, None]
    u = jnp.arange(T)[None, :]
    mask = (u >= t - pad) & (u <= t + pad)
    return mask.astype(dtype) / jnp.asarray(size, dtype)


# ----------------------------- kernel ------------------------------------
def _decomp_kernel(x_ref, w_ref, out_ref):
    # x_ref:   (tm, T)        row tile of X = (B*C, T)   [time on lanes]
    # w_ref:   (T, 2*k*T)     [A_1^T .. A_k^T | (I-A_1)^T .. (I-A_k)^T]
    # out_ref: (tm, 2*k*T)    [trend blocks | season blocks], lane-dense
    out_ref[...] = jnp.dot(
        x_ref[...], w_ref[...], preferred_element_type=jnp.float32
    ).astype(out_ref.dtype)


def multi_resolutional_decomp(x, avgpool_sizes, block_rows=None,
                              compute_dtype=jnp.float32):
    """x: (B, T, C)  ->  (trend, season), each (B, T, C, k).

    compute_dtype: dtype fed to the MXU (f32 default; bf16 recommended on
    v5e/v7x where the double-f32 path sits near the MXU ridge — note bf16
    rounds the 1/size coefficients at ~3e-3 relative).
    """
    B, T, C = x.shape
    k = get_k_for_seq_len(T)
    sizes = avgpool_sizes[:k]
    kT = k * T

    # --- parameter setup (glue): single fused (T, 2*k*T) weight matrix -----
    A_list = [make_avg_matrix(T, s, jnp.float32) for s in sizes]
    eye = jnp.eye(T, dtype=jnp.float32)
    W_all = jnp.concatenate(
        [a.T for a in A_list] + [(eye - a).T for a in A_list], axis=1
    ).astype(compute_dtype)                                  # (T, 2*k*T)

    # --- lane-dense layout (glue): (B, T, C) -> (B*C, T), time on lanes ----
    M = B * C
    xt = jnp.transpose(x, (0, 2, 1)).reshape(M, T).astype(compute_dtype)

    # --- row-tile selection --------------------------------------------------
    # Small M: one grid step over the whole padded extent (no tiny tiles).
    # Large M: 512-row tiles (~85% of HBM roofline in the measured sweep),
    # ~6 MB double-buffered VMEM -> fits all generations including v7x.
    if block_rows is None:
        tm = _round_up(M, 8) if M <= 512 else 512
    else:
        tm = _round_up(int(block_rows), 8)        # enforce sublane multiple
    tm = max(8, min(tm, _round_up(M, 8)))
    Mp = _round_up(M, tm)                          # grid divides evenly
    if Mp != M:
        xt = jnp.pad(xt, ((0, Mp - M), (0, 0)))    # zero rows, discarded later

    out = pl.pallas_call(
        _decomp_kernel,
        out_shape=jax.ShapeDtypeStruct((Mp, 2 * kT), x.dtype),
        grid_spec=pltpu.PrefetchScalarGridSpec(
            num_scalar_prefetch=0,
            grid=(Mp // tm,),
            in_specs=[
                pl.BlockSpec((tm, T), lambda i: (i, 0)),        # X row tile
                # Constant index_map -> weights DMA'd once, resident.
                pl.BlockSpec((T, 2 * kT), lambda i: (0, 0)),    # W_all
            ],
            out_specs=pl.BlockSpec((tm, 2 * kT), lambda i: (i, 0)),
        ),
        compiler_params=pltpu.CompilerParams(
            dimension_semantics=("parallel",)
        ),
    )(xt, W_all)

    # --- glue: split fused output, (M, k*T) -> (B, T, C, k) ----------------
    # (Matches torch.stack(..., dim=3); consumers happy with (B, C, k, T)
    #  could skip the transpose entirely.)
    def _unflatten(y):
        y = y.reshape(B, C, k, T)
        return jnp.transpose(y, (0, 3, 1, 2))

    trend = _unflatten(out[:M, :kT])
    season = _unflatten(out[:M, kT:])
    return trend, season


# --------------------------- reference (pure JAX) -------------------------
def _reference(x, avgpool_sizes):
    B, T, C = x.shape
    k = get_k_for_seq_len(T)
    trends, seasons = [], []
    for s in avgpool_sizes[:k]:
        pad = s // 2
        xp = jnp.pad(x, ((0, 0), (pad, pad), (0, 0)))  # zero pad along time
        # count_include_pad=True -> divide by s always
        windows = jnp.stack([xp[:, j:j + T, :] for j in range(s)], axis=0)
        tr = windows.sum(axis=0) / s
        trends.append(tr)
        seasons.append(x - tr)
    return jnp.stack(trends, axis=3), jnp.stack(seasons, axis=3)


# ------------------------------- main -------------------------------------
if __name__ == "__main__":
    cfg = Configs()
    key = jax.random.PRNGKey(0)

    # (B, T, C, block_rows):
    #   (2, 96, 16, None): k=6, single-step grid, 1152-wide (9x128) output
    #   (2, 48,  5, 8)   : k=4, multi-step parallel grid + row-padding path
    #   (2, 24,  4, None): k=2 tiny configuration
    #   (2, 12,  3, None): k=2, shortest supported sequence
    for (B, T, C, block_rows) in [(2, 96, 16, None), (2, 48, 5, 8),
                                  (2, 24, 4, None), (2, 12, 3, None)]:
        k = get_k_for_seq_len(T)
        key, sub = jax.random.split(key)
        x = jax.random.normal(sub, (B, T, C), dtype=jnp.float32)

        trend, season = multi_resolutional_decomp(
            x, cfg.avgpool_sizes, block_rows=block_rows)
        trend, season = jax.block_until_ready((trend, season))

        ref_trend, ref_season = _reference(x, cfg.avgpool_sizes)
        assert trend.shape == (B, T, C, k)
        assert season.shape == (B, T, C, k)
        np.testing.assert_allclose(np.asarray(trend), np.asarray(ref_trend),
                                   rtol=1e-5, atol=1e-5)
        np.testing.assert_allclose(np.asarray(season), np.asarray(ref_season),
                                   rtol=1e-5, atol=1e-5)

    print("KERNEL_OK")
</pallas_src>

<mosaic_0001>
module attributes {stable_mosaic.version = 11 : i64} {
  func.func @_decomp_kernel(%arg0: i32, %arg1: memref<32x96xf32, #tpu.memory_space<vmem>>, %arg2: memref<96x1152xf32, #tpu.memory_space<vmem>>, %arg3: memref<32x1152xf32, #tpu.memory_space<vmem>>) attributes {dimension_semantics = [#tpu.dimension_semantics<parallel>], iteration_bounds = array<i64: 1>, scalar_prefetch = 0 : i64, scratch_operands = 0 : i64, tpu.core_type = #tpu.core_type<tc>, window_params = [{transform_indices = @transform_0, window_bounds = array<i64: 32, 96>}, {pipeline_mode = #tpu.pipeline_mode<synchronous>, transform_indices = @transform_1, window_bounds = array<i64: 96, 1152>}, {transform_indices = @transform_2, window_bounds = array<i64: 32, 1152>}]} {
    %c0 = arith.constant 0 : index
    %c0_0 = arith.constant 0 : index
    %0 = vector.load %arg1[%c0, %c0_0] : memref<32x96xf32, #tpu.memory_space<vmem>>, vector<32x96xf32>
    %c0_1 = arith.constant 0 : index
    %c0_2 = arith.constant 0 : index
    %1 = vector.load %arg2[%c0_1, %c0_2] : memref<96x1152xf32, #tpu.memory_space<vmem>>, vector<96x1152xf32>
    %cst = arith.constant dense<0.000000e+00> : vector<32x1152xf32>
    %2 = tpu.matmul %0, %1, %cst {dimension_numbers = #tpu.dot_dimension_numbers<[1], [0], [0], [1], [0, 0, 1, 1], [], []>} : vector<32x96xf32>, vector<96x1152xf32>, vector<32x1152xf32> -> vector<32x1152xf32>
    %c0_3 = arith.constant 0 : index
    %c0_4 = arith.constant 0 : index
    %3 = vector.load %arg3[%c0_3, %c0_4] : memref<32x1152xf32, #tpu.memory_space<vmem>>, vector<32x1152xf32>
    tpu.vector_store %arg3[%c0_3, %c0_4], %2 {strides = array<i32>} : memref<32x1152xf32, #tpu.memory_space<vmem>>, vector<32x1152xf32>,
    return
  }
  func.func @transform_0(%arg0: i32) -> (i32, i32) {
    %c0_i32 = arith.constant 0 : i32
    %c0_i32_0 = arith.constant 0 : i32
    return %arg0, %c0_i32 : i32, i32
  }
  func.func @transform_1(%arg0: i32) -> (i32, i32) {
    %c0_i32 = arith.constant 0 : i32
    %c0_i32_0 = arith.constant 0 : i32
    %c0_i32_1 = arith.constant 0 : i32
    return %c0_i32, %c0_i32_0 : i32, i32
  }
  func.func @transform_2(%arg0: i32) -> (i32, i32) {
    %c0_i32 = arith.constant 0 : i32
    %c0_i32_0 = arith.constant 0 : i32
    return %arg0, %c0_i32 : i32, i32
  }
}

</mosaic_0001>

<bundles_post_ra>
// kernel: tpu_custom_call.1
= control target key start
LH: loop header
LB: loop body
LE: loop exit
PB: predicated region body
PF: predicated region fallthrough
CT: control target
= control target key end

     0   :  { %7 = vsyncpa [#allocation3], 0  ;;  %s1067_s0 = inlined_call_operand.hbm [shape: f32[32,96], index: 0, kind: input, shape index: {}]   ;;  %s1068_s1 = inlined_call_operand.hbm [shape: f32[96,1152], index: 1, kind: input, shape index: {}]   ;;  %s1069_s2 = inlined_call_operand.hbm [shape: f32[32,1152], index: 2, kind: output, shape index: {}]  }
   0x1   :  { %8 = vsyncpa [#allocation6], 0 }
   0x2   :  { %9 = vsyncpa [#allocation4], 0  ;;  %s938_s9 = smov [#allocation2]   ;;  %s866_s13 = scalar_lea.hbm %s1067_s0, 512 }
   0x3   :  { %s15_s10 = sshll.u32 %s938_s9, 4  ;;  %p867_p0 = scmp.ne.s32.totalorder %s1067_s0, %s866_s13  ;;  %s16_s10 = int_to_ptr.vmem [resolvable:$true] %s15_s10 }
   0x4   :  { %p870_p1 = scmp.lt.u32.totalorder %s866_s13, %s1067_s0 }
   0x6   :  { %p872_p2 = pnand %p870_p1, %p867_p0 }
   0x8   :  { %875 = shalt.err (!%p872_p2)
}
   0x9   :  { %s876_s18 = scalar_lea.vmem %s16_s10, 512  ;;  %p881_p4 = scmp.lt.s32.totalorder %s16_s10, %s16_s10 }
   0xa   :  { %p877_p3 = scmp.ne.s32.totalorder %s16_s10, %s876_s18  ;;  %p882_p5 = scmp.lt.s32.totalorder %s876_s18, %s876_s18 }
   0xc   :  { %p883_p6 = por %p882_p5, %p881_p4 }
   0xe   :  { %p884_p7 = pnand %p883_p6, %p877_p3 }
  0x10   :  { %887 = shalt.err (!%p884_p7)
}
  0x11   :  { %s939_s19 = smov 128   ;;  %s940_s20 = smov 8  }
  0x12   :  { %21 = dma.hbm_to_vmem [thread:$0]  %s1067_s0, 512, %s16_s10, [#allocation3], %s939_s19, %s939_s19, %s940_s20  }
  0x13   :  { %s941_s23 = smov [#allocation5]   ;;  %s888_s27 = scalar_lea.hbm %s1068_s1, 13824 }
  0x14   :  { %s27_s24 = sshll.u32 %s941_s23, 4  ;;  %p889_p8 = scmp.ne.s32.totalorder %s1068_s1, %s888_s27  ;;  %s28_s24 = int_to_ptr.vmem [resolvable:$true] %s27_s24 }
  0x15   :  { %p892_p9 = scmp.lt.u32.totalorder %s888_s27, %s1068_s1 }
  0x17   :  { %p894_p10 = pnand %p892_p9, %p889_p8 }
  0x19   :  { %897 = shalt.err (!%p894_p10)
}
  0x1a   :  { %s898_s4 = scalar_lea.vmem %s28_s24, 13824  ;;  %p903_p12 = scmp.lt.s32.totalorder %s28_s24, %s28_s24 }
  0x1b   :  { %p899_p11 = scmp.ne.s32.totalorder %s28_s24, %s898_s4  ;;  %p904_p13 = scmp.lt.s32.totalorder %s898_s4, %s898_s4 }
  0x1d   :  { %p905_p0 = por %p904_p13, %p903_p12 }
  0x1f   :  { %p906_p1 = pnand %p905_p0, %p899_p11 }
  0x21   :  { %909 = shalt.err (!%p906_p1)
}
  0x22   :  { %s942_s0 = smov 1152   ;;  %s943_s5 = smov 72  }
  0x23   :  { %33 = dma.hbm_to_vmem [thread:$0]  %s1068_s1, 13824, %s28_s24, [#allocation6], %s942_s0, %s942_s0, %s943_s5  }
  0x24   :  { %932 = dma.done.wait [#allocation3], 512  }
  0x25   :  { %933 = vsyncadd [#allocation3], 4294966784 }
  0x26   :  { %934 = dma.done.wait [#allocation6], 13824  }
  0x27   :  { %935 = vsyncadd [#allocation6], 4294953472  ;;  %v944_v0 = vmov 0.0   ;;  %v45_v1 = vld [vmem:[#allocation5 + $0x8] sm:$0xff]  ;;  %v54_v2 = vld [vmem:[#allocation5 + $0x50] sm:$0xff]  ;;  %vm152_vm0 = vcmask 785408  }
  0x28   :  { %229 = vmatprep.mubr.f32.mxu0 %v944_v0  ;;  %318 = vmatprep.mubr.f32.mxu1 %v944_v0  ;;  %v47_v3 = vld [vmem:[#allocation5 + $0x18] sm:$0xff]  ;;  %v726_v4 = vpack.c.bf16 %v54_v2, %v45_v1  ;;  %v56_v5 = vld [vmem:[#allocation5 + $0x60] sm:$0xff]  ;;  %v53_v7 = vld [vmem:[#allocation5 + $0x48] sm:$0xff]  ;;  %s945_s1 = smov [#allocation7]  }
  0x29   :  { %v44_v6 = vld [vmem:[#allocation5] sm:$0xff]  ;;  %v750_v8 = vpack.c.bf16 %v56_v5, %v47_v3  ;;  %v46_v10 = vld [vmem:[#allocation5 + $0x10] sm:$0xff]  ;;  %v55_v11 = vld [vmem:[#allocation5 + $0x58] sm:$0xff]  ;;  %s647_s8 = sshll.u32 %s945_s1, 4  ;;  %s648_s8 = int_to_ptr.vmem [resolvable:$true] %s647_s8 }
  0x2a   :  { %v728_v9 = vpack.c.bf16 %v53_v7, %v44_v6  ;;  %v63_v12 = vld [vmem:[#allocation5 + $0x98] sm:$0xff]  ;;  %727 = vmatprep.subr.bf16.mxu0 %v726_v4  ;;  %v752_v13 = vpack.c.bf16 %v55_v11, %v46_v10  ;;  %v72_v14 = vld [vmem:[#allocation5 + $0xe0] sm:$0xff]  ;;  %v65_v15 = vld [vmem:[#allocation5 + $0xa8] sm:$0xff]  ;;  %s910_s9 = scalar_lea.vmem %s648_s8, 4608  ;;  %p915_p3 = scmp.lt.s32.totalorder %s648_s8, %s648_s8 }
  0x2b   :  { %v74_v16 = vld [vmem:[#allocation5 + $0xf0] sm:$0xff]  ;;  %751 = vmatprep.subr.bf16.mxu1 %v750_v8  ;;  %v730_v17 = vpack.c.bf16 %v72_v14, %v63_v12  ;;  %v71_v20 = vld [vmem:[#allocation5 + $0xd8] sm:$0xff]  ;;  %v64_v21 = vld [vmem:[#allocation5 + $0xa0] sm:$0xff]  ;;  %p911_p2 = scmp.ne.s32.totalorder %s648_s8, %s910_s9  ;;  %p916_p4 = scmp.lt.s32.totalorder %s910_s9, %s910_s9 }
  0x2c   :  { %729 = vmatpush1.bf16.msra.mxu0 %v728_v9  ;;  %v754_v18 = vpack.c.bf16 %v74_v16, %v65_v15  ;;  %v62_v19 = vld [vmem:[#allocation5 + $0x90] sm:$0xff]  ;;  %753 = vmatpush1.bf16.msra.mxu1 %v752_v13  ;;  %v73_v23 = vld [vmem:[#allocation5 + $0xe8] sm:$0xff]  ;;  %v83_v28 = vld [vmem:[#allocation5 + $0x138] sm:$0xff] }
  0x2d   :  { %v732_v22 = vpack.c.bf16 %v71_v20, %v62_v19  ;;  %v81_v24 = vld [vmem:[#allocation5 + $0x128] sm:$0xff]  ;;  %v90_v25 = vld [vmem:[#allocation5 + $0x170] sm:$0xff]  ;;  %731 = vmatprep.subr.bf16.mxu0 %v730_v17  ;;  %v756_v26 = vpack.c.bf16 %v73_v23, %v64_v21  ;;  %v92_v29 = vld [vmem:[#allocation5 + $0x180] sm:$0xff]  ;;  %p917_p5 = por %p916_p4, %p915_p3 }
  0x2e   :  { %755 = vmatprep.subr.bf16.mxu1 %v754_v18  ;;  %v734_v27 = vpack.c.bf16 %v90_v25, %v81_v24  ;;  %v80_v30 = vld [vmem:[#allocation5 + $0x120] sm:$0xff]  ;;  %v758_v31 = vpack.c.bf16 %v92_v29, %v83_v28  ;;  %v89_v32 = vld [vmem:[#allocation5 + $0x168] sm:$0xff]  ;;  %v82_v33 = vld [vmem:[#allocation5 + $0x130] sm:$0xff] }
  0x2f   :  { %v91_v34 = vld [vmem:[#allocation5 + $0x178] sm:$0xff]  ;;  %v736_v35 = vpack.c.bf16 %v89_v32, %v80_v30  ;;  %v108_v37 = vld [vmem:[#allocation5 + $0x200] sm:$0xff]  ;;  %v101_v38 = vld [vmem:[#allocation5 + $0x1c8] sm:$0xff]  ;;  %p918_p6 = pnand %p917_p5, %p911_p2 }
  0x30   :  { %733 = vmatpush1.bf16.msra.mxu0 %v732_v22  ;;  %v99_v36 = vld [vmem:[#allocation5 + $0x1b8] sm:$0xff]  ;;  %757 = vmatpush1.bf16.msra.mxu1 %v756_v26  ;;  %v760_v39 = vpack.c.bf16 %v91_v34, %v82_v33  ;;  %v110_v41 = vld [vmem:[#allocation5 + $0x210] sm:$0xff]  ;;  %v100_v45 = vld [vmem:[#allocation5 + $0x1c0] sm:$0xff] }
  0x31   :  { %735 = vmatprep.subr.bf16.mxu0 %v734_v27  ;;  %v738_v40 = vpack.c.bf16 %v108_v37, %v99_v36  ;;  %v98_v42 = vld [vmem:[#allocation5 + $0x1b0] sm:$0xff]  ;;  %v107_v43 = vld [vmem:[#allocation5 + $0x1f8] sm:$0xff]  ;;  %759 = vmatprep.subr.bf16.mxu1 %v758_v31  ;;  %v762_v44 = vpack.c.bf16 %v110_v41, %v101_v38  ;;  %v109_v46 = vld [vmem:[#allocation5 + $0x208] sm:$0xff] }
  0x32   :  { %v117_v47 = vld [vmem:[#allocation5 + $0x248] sm:$0xff]  ;;  %v126_v48 = vld [vmem:[#allocation5 + $0x290] sm:$0xff]  ;;  %v119_v49 = vld [vmem:[#allocation5 + $0x258] sm:$0xff]  ;;  %v740_v51 = vpack.c.bf16 %v107_v43, %v98_v42  ;;  %v764_v52 = vpack.c.bf16 %v109_v46, %v100_v45 }
  0x33   :  { %v128_v50 = vld [vmem:[#allocation5 + $0x2a0] sm:$0xff]  ;;  %v742_v53 = vpack.c.bf16 %v126_v48, %v117_v47  ;;  %v125_v55 = vld [vmem:[#allocation5 + $0x288] sm:$0xff]  ;;  %v118_v56 = vld [vmem:[#allocation5 + $0x250] sm:$0xff] }
  0x34   :  { %737 = vmatpush1.bf16.msra.mxu0 %v736_v35  ;;  %761 = vmatpush1.bf16.msra.mxu1 %v760_v39  ;;  %v116_v54 = vld [vmem:[#allocation5 + $0x240] sm:$0xff]  ;;  %v766_v57 = vpack.c.bf16 %v128_v50, %v119_v49  ;;  %v127_v58 = vld [vmem:[#allocation5 + $0x298] sm:$0xff]  ;;  %v137_v61 = vld [vmem:[#allocation5 + $0x2e8] sm:$0xff] }
  0x35   :  { %739 = vmatprep.subr.bf16.mxu0 %v738_v40  ;;  %763 = vmatprep.subr.bf16.mxu1 %v762_v44  ;;  %v135_v59 = vld [vmem:[#allocation5 + $0x2d8] sm:$0xff]  ;;  %v144_v60 = vld [vmem:[#allocation5 + $0x320] sm:$0xff]  ;;  %v146_v62 = vld [vmem:[#allocation5 + $0x330] sm:$0xff]  ;;  %v744_v63 = vpack.c.bf16 %v125_v55, %v116_v54  ;;  %v768_v1 = vpack.c.bf16 %v127_v58, %v118_v56 }
  0x36   :  { %v746_v2 = vpack.c.bf16 %v144_v60, %v135_v59  ;;  %v134_v3 = vld [vmem:[#allocation5 + $0x2d0] sm:$0xff]  ;;  %v143_v4 = vld [vmem:[#allocation5 + $0x318] sm:$0xff]  ;;  %v136_v5 = vld [vmem:[#allocation5 + $0x2e0] sm:$0xff]  ;;  %v770_v6 = vpack.c.bf16 %v146_v62, %v137_v61 }
  0x37   :  { %v145_v7 = vld [vmem:[#allocation5 + $0x328] sm:$0xff]  ;;  %v58_v9 = vld [vmem:[#allocation5 + $0x70] sm:$0xff]  ;;  %v51_v10 = vld [vmem:[#allocation5 + $0x38] sm:$0xff]  ;;  %v748_v12 = vpack.c.bf16 %v143_v4, %v134_v3 }
  0x38   :  { %741 = vmatpush1.bf16.msra.mxu0 %v740_v51  ;;  %765 = vmatpush1.bf16.msra.mxu1 %v764_v52  ;;  %v49_v8 = vld [vmem:[#allocation5 + $0x28] sm:$0xff]  ;;  %v60_v11 = vld [vmem:[#allocation5 + $0x80] sm:$0xff]  ;;  %v772_v13 = vpack.c.bf16 %v145_v7, %v136_v5  ;;  %v50_v17 = vld [vmem:[#allocation5 + $0x30] sm:$0xff] }
  0x39   :  { %743 = vmatprep.subr.bf16.mxu0 %v742_v53  ;;  %767 = vmatprep.subr.bf16.mxu1 %v766_v57  ;;  %v774_v14 = vpack.c.bf16 %v58_v9, %v49_v8  ;;  %v48_v15 = vld [vmem:[#allocation5 + $0x20] sm:$0xff]  ;;  %v57_v16 = vld [vmem:[#allocation5 + $0x68] sm:$0xff]  ;;  %v798_v18 = vpack.c.bf16 %v60_v11, %v51_v10  ;;  %v59_v19 = vld [vmem:[#allocation5 + $0x78] sm:$0xff] }
  0x3a   :  { %v67_v20 = vld [vmem:[#allocation5 + $0xb8] sm:$0xff]  ;;  %v76_v21 = vld [vmem:[#allocation5 + $0x100] sm:$0xff]  ;;  %v69_v22 = vld [vmem:[#allocation5 + $0xc8] sm:$0xff]  ;;  %v776_v25 = vpack.c.bf16 %v57_v16, %v48_v15  ;;  %v800_v26 = vpack.c.bf16 %v59_v19, %v50_v17 }
  0x3b   :  { %v78_v23 = vld [vmem:[#allocation5 + $0x110] sm:$0xff]  ;;  %v990_v24 = vld [vmem:[#allocation2] sm:$0xff]  ;;  %v778_v27 = vpack.c.bf16 %v76_v21, %v67_v20  ;;  %v75_v29 = vld [vmem:[#allocation5 + $0xf8] sm:$0xff] }
  0x3c   :  { %745 = vmatpush1.bf16.msra.mxu0 %v744_v63  ;;  %769 = vmatpush1.bf16.msra.mxu1 %v768_v1  ;;  %v66_v28 = vld [vmem:[#allocation5 + $0xb0] sm:$0xff]  ;;  %v68_v30 = vld [vmem:[#allocation5 + $0xc0] sm:$0xff]  ;;  %v802_v31 = vpack.c.bf16 %v78_v23, %v69_v22  ;;  %v77_v32 = vld [vmem:[#allocation5 + $0x108] sm:$0xff] }
  0x3d   :  { %747 = vmatprep.subr.bf16.mxu0 %v746_v2  ;;  %771 = vmatprep.subr.bf16.mxu1 %v770_v6  ;;  %v85_v33 = vld [vmem:[#allocation5 + $0x148] sm:$0xff]  ;;  %v94_v34 = vld [vmem:[#allocation5 + $0x190] sm:$0xff]  ;;  %v87_v35 = vld [vmem:[#allocation5 + $0x158] sm:$0xff]  ;;  %v780_v37 = vpack.c.bf16 %v75_v29, %v66_v28  ;;  %v804_v39 = vpack.c.bf16 %v77_v32, %v68_v30 }
  0x3e   :  { %v96_v36 = vld [vmem:[#allocation5 + $0x1a0] sm:$0xff]  ;;  %v996_v38 = vld [vmem:[#allocation2 + $0x8] sm:$0xff]  ;;  %v782_v40 = vpack.c.bf16 %v94_v34, %v85_v33  ;;  %v86_v43 = vld [vmem:[#allocation5 + $0x150] sm:$0xff] }
  0x3f   :  { %v84_v41 = vld [vmem:[#allocation5 + $0x140] sm:$0xff]  ;;  %v93_v42 = vld [vmem:[#allocation5 + $0x188] sm:$0xff]  ;;  %v806_v44 = vpack.c.bf16 %v96_v36, %v87_v35  ;;  %v95_v45 = vld [vmem:[#allocation5 + $0x198] sm:$0xff] }
  0x40   :  { %749 = vmatpush1.bf16.msra.mxu0 %v748_v12  ;;  %773 = vmatpush1.bf16.msra.mxu1 %v772_v13  ;;  %v103_v46 = vld [vmem:[#allocation5 + $0x1d8] sm:$0xff]  ;;  %v112_v47 = vld [vmem:[#allocation5 + $0x220] sm:$0xff]  ;;  %v105_v48 = vld [vmem:[#allocation5 + $0x1e8] sm:$0xff]  ;;  %v784_v50 = vpack.c.bf16 %v93_v42, %v84_v41  ;;  %v808_v52 = vpack.c.bf16 %v95_v45, %v86_v43 }
  0x41   :  { %775 = vmatprep.subr.bf16.mxu0 %v774_v14  ;;  %799 = vmatprep.subr.bf16.mxu1 %v798_v18  ;;  %v114_v49 = vld [vmem:[#allocation5 + $0x230] sm:$0xff]  ;;  %v786_v53 = vpack.c.bf16 %v112_v47, %v103_v46  ;;  %v111_v55 = vld [vmem:[#allocation5 + $0x218] sm:$0xff]  ;;  %v104_v56 = vld [vmem:[#allocation5 + $0x1e0] sm:$0xff] }
  0x42   :  { %v1004_v51 = vld [vmem:[#allocation2 + $0x10] sm:$0xff]  ;;  %v810_v57 = vpack.c.bf16 %v114_v49, %v105_v48  ;;  %v113_v58 = vld [vmem:[#allocation5 + $0x228] sm:$0xff]  ;;  %v123_v61 = vld [vmem:[#allocation5 + $0x278] sm:$0xff] }
  0x43   :  { %660 = vmatmul.mubr.msk.f32.vlgmr.msra.gmra.mrb[0].mxu0 %vm152_vm0, %v990_v24  ;;  %664 = vmatmul.mubr.msk.f32.vlgmr.msra.gmra.mrb[0].mxu1 %vm152_vm0, %v990_v24  ;;  %v102_v54 = vld [vmem:[#allocation5 + $0x1d0] sm:$0xff]  ;;  %v121_v59 = vld [vmem:[#allocation5 + $0x268] sm:$0xff]  ;;  %v132_v62 = vld [vmem:[#allocation5 + $0x2c0] sm:$0xff]  ;;  %v812_v2 = vpack.c.bf16 %v113_v58, %v104_v56 }
  0x44   :  { %777 = vmatpush1.bf16.msra.mxu0 %v776_v25  ;;  %801 = vmatpush1.bf16.msra.mxu1 %v800_v26  ;;  %v130_v60 = vld [vmem:[#allocation5 + $0x2b0] sm:$0xff]  ;;  %v788_v63 = vpack.c.bf16 %v111_v55, %v102_v54  ;;  %v1012_v1 = vld [vmem:[#allocation2 + $0x18] sm:$0xff]  ;;  %v120_v4 = vld [vmem:[#allocation5 + $0x260] sm:$0xff]  ;;  %v814_v7 = vpack.c.bf16 %v132_v62, %v123_v61 }
  0x45   :  { %779 = vmatprep.subr.bf16.mxu0 %v778_v27  ;;  %803 = vmatprep.subr.bf16.mxu1 %v802_v31  ;;  %v790_v3 = vpack.c.bf16 %v130_v60, %v121_v59  ;;  %v129_v5 = vld [vmem:[#allocation5 + $0x2a8] sm:$0xff]  ;;  %v122_v6 = vld [vmem:[#allocation5 + $0x270] sm:$0xff]  ;;  %v131_v8 = vld [vmem:[#allocation5 + $0x2b8] sm:$0xff] }
  0x46   :  { %235 = vmatprep.mubr.f32.mxu0 %v944_v0  ;;  %324 = vmatprep.mubr.f32.mxu1 %v944_v0  ;;  %v139_v9 = vld [vmem:[#allocation5 + $0x2f8] sm:$0xff]  ;;  %v148_v10 = vld [vmem:[#allocation5 + $0x340] sm:$0xff]  ;;  %v141_v11 = vld [vmem:[#allocation5 + $0x308] sm:$0xff]  ;;  %v792_v13 = vpack.c.bf16 %v129_v5, %v120_v4  ;;  %v816_v14 = vpack.c.bf16 %v131_v8, %v122_v6 }
  0x47   :  { %661 = vmatmul.mubr.msk.f32.gmra.mrb[2].mxu0 %vm152_vm0, %v996_v38  ;;  %665 = vmatmul.mubr.msk.f32.gmra.mrb[2].mxu1 %vm152_vm0, %v996_v38  ;;  %v150_v12 = vld [vmem:[#allocation5 + $0x350] sm:$0xff]  ;;  %v794_v15 = vpack.c.bf16 %v148_v10, %v139_v9  ;;  %v147_v17 = vld [vmem:[#allocation5 + $0x338] sm:$0xff]  ;;  %v140_v18 = vld [vmem:[#allocation5 + $0x300] sm:$0xff] }
  0x48   :  { %781 = vmatpush1.bf16.msra.mxu0 %v780_v37  ;;  %805 = vmatpush1.bf16.msra.mxu1 %v804_v39  ;;  %v138_v16 = vld [vmem:[#allocation5 + $0x2f0] sm:$0xff]  ;;  %v818_v19 = vpack.c.bf16 %v150_v12, %v141_v11  ;;  %v149_v20 = vld [vmem:[#allocation5 + $0x348] sm:$0xff]  ;;  %v52_v21 = vld [vmem:[#allocation5 + $0x40] sm:$0xff] }
  0x49   :  { %783 = vmatprep.subr.bf16.mxu0 %v782_v40  ;;  %807 = vmatprep.subr.bf16.mxu1 %v806_v44  ;;  %v61_v22 = vld [vmem:[#allocation5 + $0x88] sm:$0xff]  ;;  %v796_v23 = vpack.c.bf16 %v147_v17, %v138_v16  ;;  %v820_v25 = vpack.c.bf16 %v149_v20, %v140_v18  ;;  %v70_v27 = vld [vmem:[#allocation5 + $0xd0] sm:$0xff]  ;;  %v79_v28 = vld [vmem:[#allocation5 + $0x118] sm:$0xff] }
  0x4a   :  { %241 = vmatprep.mubr.f32.mxu0 %v944_v0  ;;  %330 = vmatprep.mubr.f32.mxu1 %v944_v0  ;;  %v822_v26 = vpack.c.bf16 %v61_v22, %v52_v21  ;;  %v826_v29 = vpack.c.bf16 %v79_v28, %v70_v27  ;;  %v88_v30 = vld [vmem:[#allocation5 + $0x160] sm:$0xff]  ;;  %v97_v31 = vld [vmem:[#allocation5 + $0x1a8] sm:$0xff]  ;;  %v106_v33 = vld [vmem:[#allocation5 + $0x1f0] sm:$0xff] }
  0x4b   :  { %662 = vmatmul.mubr.msk.f32.gmra.mrb[4].mxu0 %vm152_vm0, %v1004_v51  ;;  %666 = vmatmul.mubr.msk.f32.gmra.mrb[4].mxu1 %vm152_vm0, %v1004_v51  ;;  %v830_v32 = vpack.c.bf16 %v97_v31, %v88_v30  ;;  %v115_v34 = vld [vmem:[#allocation5 + $0x238] sm:$0xff]  ;;  %v124_v36 = vld [vmem:[#allocation5 + $0x280] sm:$0xff]  ;;  %v133_v37 = vld [vmem:[#allocation5 + $0x2c8] sm:$0xff] }
  0x4c   :  { %785 = vmatpush1.bf16.msra.mxu0 %v784_v50  ;;  %809 = vmatpush1.bf16.msra.mxu1 %v808_v52  ;;  %v834_v35 = vpack.c.bf16 %v115_v34, %v106_v33  ;;  %v838_v39 = vpack.c.bf16 %v133_v37, %v124_v36  ;;  %v142_v40 = vld [vmem:[#allocation5 + $0x310] sm:$0xff]  ;;  %v151_v41 = vld [vmem:[#allocation5 + $0x358] sm:$0xff] }
  0x4d   :  { %787 = vmatprep.subr.bf16.mxu0 %v786_v53  ;;  %811 = vmatprep.subr.bf16.mxu1 %v810_v57  ;;  %v842_v42 = vpack.c.bf16 %v151_v41, %v142_v40 }
  0x4e   :  { %247 = vmatprep.mubr.f32.mxu0 %v944_v0  ;;  %336 = vmatprep.mubr.f32.mxu1 %v944_v0 }
  0x4f   :  { %663 = vmatmul.mubr.msk.f32.gmra.mrb[6].mxu0 %vm152_vm0, %v1012_v1  ;;  %667 = vmatmul.mubr.msk.f32.gmra.mrb[6].mxu1 %vm152_vm0, %v1012_v1 }
  0x50   :  { %789 = vmatpush1.bf16.msra.mxu0 %v788_v63  ;;  %813 = vmatpush1.bf16.msra.mxu1 %v812_v2 }
  0x51   :  { %791 = vmatprep.subr.bf16.mxu0 %v790_v3  ;;  %815 = vmatprep.subr.bf16.mxu1 %v814_v7 }
  0x52   :  { %407 = vmatprep.mubr.f32.mxu0 %v944_v0  ;;  %496 = vmatprep.mubr.f32.mxu1 %v944_v0 }
  0x54   :  { %793 = vmatpush1.bf16.msra.mxu0 %v792_v13  ;;  %817 = vmatpush1.bf16.msra.mxu1 %v816_v14 }
  0x55   :  { %795 = vmatprep.subr.bf16.mxu0 %v794_v15  ;;  %819 = vmatprep.subr.bf16.mxu1 %v818_v19 }
  0x58   :  { %797 = vmatpush1.bf16.msra.mxu0 %v796_v23  ;;  %821 = vmatpush1.bf16.msra.mxu1 %v820_v25 }
  0x59   :  { %823 = vmatprep.subr.bf16.mxu0 %v822_v26  ;;  %846 = vmatprep.subr.bf16.mxu1 %v822_v26 }
  0x5b   :  { %668 = vmatmul.mubr.msk.f32.vlgmr.msra.gmra.mrb[8].mxu0 %vm152_vm0, %v990_v24  ;;  %672 = vmatmul.mubr.msk.f32.vlgmr.msra.gmra.mrb[8].mxu1 %vm152_vm0, %v990_v24 }
  0x5c   :  { %825 = vmatpush3.bf16.msra.mxu0 %v822_v26  ;;  %852 = vmatpush3.bf16.msra.mxu1 %v822_v26 }
  0x5d   :  { %827 = vmatprep.subr.bf16.mxu0 %v826_v29  ;;  %847 = vmatprep.subr.bf16.mxu1 %v826_v29 }
  0x5e   :  { %413 = vmatprep.mubr.f32.mxu0 %v944_v0  ;;  %502 = vmatprep.mubr.f32.mxu1 %v944_v0 }
  0x5f   :  { %669 = vmatmul.mubr.msk.f32.gmra.mrb[10].mxu0 %vm152_vm0, %v996_v38  ;;  %673 = vmatmul.mubr.msk.f32.gmra.mrb[10].mxu1 %vm152_vm0, %v996_v38 }
  0x60   :  { %829 = vmatpush3.bf16.msra.mxu0 %v826_v29  ;;  %853 = vmatpush3.bf16.msra.mxu1 %v826_v29 }
  0x61   :  { %831 = vmatprep.subr.bf16.mxu0 %v830_v32  ;;  %848 = vmatprep.subr.bf16.mxu1 %v830_v32 }
  0x62   :  { %419 = vmatprep.mubr.f32.mxu0 %v944_v0  ;;  %508 = vmatprep.mubr.f32.mxu1 %v944_v0 }
  0x63   :  { %670 = vmatmul.mubr.msk.f32.gmra.mrb[12].mxu0 %vm152_vm0, %v1004_v51  ;;  %674 = vmatmul.mubr.msk.f32.gmra.mrb[12].mxu1 %vm152_vm0, %v1004_v51 }
  0x64   :  { %833 = vmatpush3.bf16.msra.mxu0 %v830_v32  ;;  %854 = vmatpush3.bf16.msra.mxu1 %v830_v32 }
  0x65   :  { %835 = vmatprep.subr.bf16.mxu0 %v834_v35  ;;  %849 = vmatprep.subr.bf16.mxu1 %v834_v35 }
  0x66   :  { %425 = vmatprep.mubr.f32.mxu0 %v944_v0  ;;  %514 = vmatprep.mubr.f32.mxu1 %v944_v0 }
  0x67   :  { %671 = vmatmul.mubr.msk.f32.gmra.mrb[14].mxu0 %vm152_vm0, %v1012_v1  ;;  %675 = vmatmul.mubr.msk.f32.gmra.mrb[14].mxu1 %vm152_vm0, %v1012_v1 }
  0x68   :  { %837 = vmatpush3.bf16.msra.mxu0 %v834_v35  ;;  %855 = vmatpush3.bf16.msra.mxu1 %v834_v35 }
  0x69   :  { %839 = vmatprep.subr.bf16.mxu0 %v838_v39  ;;  %850 = vmatprep.subr.bf16.mxu1 %v838_v39 }
  0x6a   :  { %720 = vmatprep.mubr.msk.f32.mxu0 %vm152_vm0, %v990_v24  ;;  %723 = vmatprep.mubr.msk.f32.mxu1 %vm152_vm0, %v1004_v51 }
  0x6c   :  { %841 = vmatpush3.bf16.msra.mxu0 %v838_v39  ;;  %856 = vmatpush3.bf16.msra.mxu1 %v838_v39 }
  0x6d   :  { %843 = vmatprep.subr.bf16.mxu0 %v842_v42  ;;  %851 = vmatprep.subr.bf16.mxu1 %v842_v42 }
  0x70   :  { %845 = vmatpush3.bf16.msra.mxu0 %v842_v42  ;;  %857 = vmatpush3.bf16.msra.mxu1 %v842_v42 }
  0x73   :  { %721 = vmatmul.mubr.msk.f32.vlgmr.msra.gmra.mrb[16].mxu0 %vm152_vm0, %v996_v38  ;;  %724 = vmatmul.mubr.msk.f32.vlgmr.msra.gmra.mrb[16].mxu1 %vm152_vm0, %v1012_v1 }
 0x116   :  { %v231_v0 = vpop.f32.mrb[0].mxu0  ;;  %v320_v43 = vpop.f32.mrb[0].mxu1 }
 0x117   :  { %606 = vst [vmem:[#allocation7] sm:$0xff] %v231_v0  ;;  %v233_v44 = vpop.f32.mrb[1].mxu0  ;;  %608 = vst [vmem:[#allocation7 + $0x10] sm:$0xff] %v320_v43  ;;  %v322_v24 = vpop.f32.mrb[1].mxu1 }
 0x118   :  { %607 = vst [vmem:[#allocation7 + $0x8] sm:$0xff] %v233_v44  ;;  %609 = vst [vmem:[#allocation7 + $0x18] sm:$0xff] %v322_v24 }
 0x11a   :  { %v237_v45 = vpop.f32.mrb[2].mxu0  ;;  %v326_v46 = vpop.f32.mrb[2].mxu1 }
 0x11b   :  { %615 = vst [vmem:[#allocation7 + $0x48] sm:$0xff] %v237_v45  ;;  %v239_v47 = vpop.f32.mrb[3].mxu0  ;;  %617 = vst [vmem:[#allocation7 + $0x58] sm:$0xff] %v326_v46  ;;  %v328_v48 = vpop.f32.mrb[3].mxu1 }
 0x11c   :  { %616 = vst [vmem:[#allocation7 + $0x50] sm:$0xff] %v239_v47  ;;  %618 = vst [vmem:[#allocation7 + $0x60] sm:$0xff] %v328_v48 }
 0x11e   :  { %v243_v38 = vpop.f32.mrb[4].mxu0  ;;  %v332_v49 = vpop.f32.mrb[4].mxu1 }
 0x11f   :  { %624 = vst [vmem:[#allocation7 + $0x90] sm:$0xff] %v243_v38  ;;  %v245_v50 = vpop.f32.mrb[5].mxu0  ;;  %626 = vst [vmem:[#allocation7 + $0xa0] sm:$0xff] %v332_v49  ;;  %v334_v51 = vpop.f32.mrb[5].mxu1 }
 0x120   :  { %625 = vst [vmem:[#allocation7 + $0x98] sm:$0xff] %v245_v50  ;;  %627 = vst [vmem:[#allocation7 + $0xa8] sm:$0xff] %v334_v51 }
 0x122   :  { %v249_v52 = vpop.f32.mrb[6].mxu0  ;;  %v338_v53 = vpop.f32.mrb[6].mxu1 }
 0x123   :  { %633 = vst [vmem:[#allocation7 + $0xd8] sm:$0xff] %v249_v52  ;;  %v251_v54 = vpop.f32.mrb[7].mxu0  ;;  %635 = vst [vmem:[#allocation7 + $0xe8] sm:$0xff] %v338_v53  ;;  %v340_v55 = vpop.f32.mrb[7].mxu1 }
 0x124   :  { %634 = vst [vmem:[#allocation7 + $0xe0] sm:$0xff] %v251_v54  ;;  %636 = vst [vmem:[#allocation7 + $0xf0] sm:$0xff] %v340_v55 }
 0x12e   :  { %v409_v56 = vpop.f32.mrb[8].mxu0  ;;  %v498_v57 = vpop.f32.mrb[8].mxu1 }
 0x12f   :  { %610 = vst [vmem:[#allocation7 + $0x20] sm:$0xff] %v409_v56  ;;  %v411_v58 = vpop.f32.mrb[9].mxu0  ;;  %612 = vst [vmem:[#allocation7 + $0x30] sm:$0xff] %v498_v57  ;;  %v500_v59 = vpop.f32.mrb[9].mxu1 }
 0x130   :  { %611 = vst [vmem:[#allocation7 + $0x28] sm:$0xff] %v411_v58  ;;  %613 = vst [vmem:[#allocation7 + $0x38] sm:$0xff] %v500_v59 }
 0x132   :  { %v415_v60 = vpop.f32.mrb[10].mxu0  ;;  %v504_v61 = vpop.f32.mrb[10].mxu1 }
 0x133   :  { %619 = vst [vmem:[#allocation7 + $0x68] sm:$0xff] %v415_v60  ;;  %v417_v62 = vpop.f32.mrb[11].mxu0  ;;  %621 = vst [vmem:[#allocation7 + $0x78] sm:$0xff] %v504_v61  ;;  %v506_v63 = vpop.f32.mrb[11].mxu1 }
 0x134   :  { %620 = vst [vmem:[#allocation7 + $0x70] sm:$0xff] %v417_v62  ;;  %622 = vst [vmem:[#allocation7 + $0x80] sm:$0xff] %v506_v63 }
 0x136   :  { %v421_v1 = vpop.f32.mrb[12].mxu0  ;;  %v510_v2 = vpop.f32.mrb[12].mxu1 }
 0x137   :  { %628 = vst [vmem:[#allocation7 + $0xb0] sm:$0xff] %v421_v1  ;;  %v423_v3 = vpop.f32.mrb[13].mxu0  ;;  %630 = vst [vmem:[#allocation7 + $0xc0] sm:$0xff] %v510_v2  ;;  %v512_v4 = vpop.f32.mrb[13].mxu1 }
 0x138   :  { %629 = vst [vmem:[#allocation7 + $0xb8] sm:$0xff] %v423_v3  ;;  %631 = vst [vmem:[#allocation7 + $0xc8] sm:$0xff] %v512_v4 }
 0x13a   :  { %v427_v5 = vpop.f32.mrb[14].mxu0  ;;  %v516_v6 = vpop.f32.mrb[14].mxu1 }
 0x13b   :  { %637 = vst [vmem:[#allocation7 + $0xf8] sm:$0xff] %v427_v5  ;;  %v429_v7 = vpop.f32.mrb[15].mxu0  ;;  %639 = vst [vmem:[#allocation7 + $0x108] sm:$0xff] %v516_v6  ;;  %v518_v8 = vpop.f32.mrb[15].mxu1 }
 0x13c   :  { %638 = vst [vmem:[#allocation7 + $0x100] sm:$0xff] %v429_v7  ;;  %640 = vst [vmem:[#allocation7 + $0x110] sm:$0xff] %v518_v8 }
 0x146   :  { %v722_v9 = vpop.f32.mrb[16].mxu0  ;;  %v725_v10 = vpop.f32.mrb[16].mxu1 }
 0x147   :  { %623 = vst [vmem:[#allocation7 + $0x88] sm:$0xff] %v722_v9  ;;  %v587_v11 = vpop.f32.mrb[17].mxu0  ;;  %641 = vst [vmem:[#allocation7 + $0x118] sm:$0xff] %v725_v10  ;;  %v597_v12 = vpop.f32.mrb[17].mxu1 }
 0x148   :  { %614 = vst [vmem:[#allocation7 + $0x40] sm:$0xff] %v587_v11  ;;  %632 = vst [vmem:[#allocation7 + $0xd0] sm:$0xff] %v597_v12 }
 0x149   :  { %921 = shalt.err (!%p918_p6)
}
 0x14a   :  { %s922_s12 = scalar_lea.hbm %s1069_s2, 4608 }
 0x14b   :  { %p923_p7 = scmp.ne.s32.totalorder %s1069_s2, %s922_s12  ;;  %p926_p8 = scmp.lt.u32.totalorder %s922_s12, %s1069_s2 }
 0x14d   :  { %p928_p9 = pnand %p926_p8, %p923_p7 }
 0x14f   :  { %931 = shalt.err (!%p928_p9)
}
 0x150   :  { %653 = dma.vmem_to_hbm [thread:$0]  %s648_s8, 4608, %s1069_s2, [#allocation4], %s942_s0, %s942_s0, %s943_s5  }
 0x151   :  { %936 = dma.done.wait [#allocation4], 4608  }
 0x152   :  { %937 = vsyncadd [#allocation4], 4294962688 }
 0x153   :  { %657 = vsyncpa [#allocation3], 1 }
 0x154   :  { %658 = vsyncpa [#allocation6], 1 }
 0x155   :  { %659 = vsyncpa [#allocation4], 1 }

</bundles_post_ra>
